<compile_context>
chip_gen: v7x
topology: tpu7x:2x2x1
jax: 0.10.0
libtpu: 0.0.40
codegen_flags: <defaults>
</compile_context>

<pallas_src>
import math

import jax
import jax.numpy as jnp
from jax.experimental import pallas as pl
from jax.experimental.pallas import tpu as pltpu

_A = math.sqrt(2.0 / math.pi)              # sqrt(2/pi)
_B = _A * 0.044715                         # sqrt(2/pi) * 0.044715  (folded)


def _gelu_kernel(x_ref, o_ref):
    x = x_ref[...]
    # f32 opmath for half dtypes (matches PyTorch opmath); free under the
    # memory bound since HBM I/O stays in the input dtype.
    xf = x if x.dtype == jnp.float32 else x.astype(jnp.float32)
    # Horner form of sqrt(2/pi) * (x + 0.044715 * x^3) = x * (A + B * x^2).
    inner = xf * (_A + _B * (xf * xf))
    half_x = 0.5 * xf
    out = half_x + half_x * jnp.tanh(inner)   # tanh -> EUP slot
    o_ref[...] = out.astype(o_ref.dtype)


def _gelu_jnp(x):
    """Plain-jnp fallback used only for a <128-element flat tail."""
    xf = x.astype(jnp.float32)
    out = half = 0.5 * xf
    out = half + half * jnp.tanh(xf * (_A + _B * (xf * xf)))
    return out.astype(x.dtype)


_LANE_CANDIDATES = (2048, 1024, 512, 256, 128)


def _choose_lane_width(n):
    # Prefer a lane width (multiple of 128) that also gives >= 8 sublane rows.
    for c in _LANE_CANDIDATES:
        if n % c == 0 and n // c >= 8:
            return c
    for c in _LANE_CANDIDATES:
        if n % c == 0:
            return c
    return None  # unreachable: n is always a multiple of 128 here


def _round_up(v, m):
    return ((v + m - 1) // m) * m


def gelu_pallas(x):
    """Tanh-approx GeLU matching the reference PyTorch GeLU module."""
    orig_shape = x.shape
    n = x.size
    if n == 0:
        return x

    flat = x.reshape(-1)
    rem = n % 128
    n_main = n - rem

    if n_main == 0:
        # Entire input is smaller than one lane row: just compute it directly.
        return _gelu_jnp(flat).reshape(orig_shape)

    main = flat[:n_main] if rem else flat
    itemsize = jnp.dtype(x.dtype).itemsize

    cols = _choose_lane_width(n_main)
    rows = n_main // cols
    x2d = main.reshape(rows, cols)

    # Bytes-budgeted row tile: ~8 MiB per block -> 4 buffered copies (in + out,
    # double-buffered) ~ 32 MiB; vmem_limit_bytes below covers it on every
    # generation (v5e scoped default 16 MiB; v7x physical 64 MiB).
    target_block_bytes = 8 * 1024 * 1024
    tile_r = max(16, (target_block_bytes // (cols * itemsize)) // 16 * 16)

    if rows <= tile_r:
        if rows > 16:
            # Split into 2 blocks so both v7x TensorCores get work.
            tile_r = _round_up((rows + 1) // 2, 16)
        else:
            tile_r = rows  # single full-extent block for tiny inputs
    else:
        # Even block count so v7x's 2 TensorCores stay balanced.
        num_blocks = pl.cdiv(rows, tile_r)
        if num_blocks % 2:
            num_blocks += 1
            tile_r = max(16, _round_up(pl.cdiv(rows, num_blocks), 16))
    grid = (pl.cdiv(rows, tile_r),)

    out2d = pl.pallas_call(
        _gelu_kernel,
        out_shape=jax.ShapeDtypeStruct((rows, cols), x.dtype),
        grid_spec=pltpu.PrefetchScalarGridSpec(
            num_scalar_prefetch=0,
            grid=grid,
            in_specs=[pl.BlockSpec((tile_r, cols), lambda i: (i, 0))],
            out_specs=pl.BlockSpec((tile_r, cols), lambda i: (i, 0)),
        ),
        compiler_params=pltpu.CompilerParams(
            dimension_semantics=("parallel",),
            vmem_limit_bytes=64 * 1024 * 1024,
        ),
    )(x2d)

    out_flat = out2d.reshape(-1)
    if rem:
        # <128-element remainder: handle on just the tail (no extra full-tensor
        # HBM passes).
        out_flat = jnp.concatenate([out_flat, _gelu_jnp(flat[n_main:])])
    return out_flat.reshape(orig_shape)


def gelu_reference(x):
    return 0.5 * x * (1.0 + jnp.tanh(_A * (x + 0.044715 * jnp.power(x, 3))))


if __name__ == "__main__":
    key = jax.random.PRNGKey(0)

    # Primary check: small NCHW-like input consistent with a generic activation.
    x = jax.random.normal(key, (2, 4, 16, 16), dtype=jnp.float32)
    out = jax.block_until_ready(gelu_pallas(x))
    ref = gelu_reference(x)
    assert out.shape == x.shape and out.dtype == x.dtype
    assert jnp.allclose(out, ref, atol=1e-5, rtol=1e-5), "mismatch vs reference"

    # Secondary check: total size not a multiple of 128 exercises both the
    # kernel prefix and the plain-jnp tail path.
    x_odd = jax.random.normal(jax.random.PRNGKey(1), (3, 5, 17), dtype=jnp.float32)
    out_odd = jax.block_until_ready(gelu_pallas(x_odd))
    ref_odd = gelu_reference(x_odd)
    assert out_odd.shape == x_odd.shape and out_odd.dtype == x_odd.dtype
    assert jnp.allclose(out_odd, ref_odd, atol=1e-5, rtol=1e-5), "mismatch (odd shape)"

    # bf16 check: f32 opmath inside the kernel, bf16 HBM I/O.
    x_bf = jax.random.normal(jax.random.PRNGKey(2), (2, 4, 16, 16), dtype=jnp.bfloat16)
    out_bf = jax.block_until_ready(gelu_pallas(x_bf))
    ref_bf = gelu_reference(x_bf.astype(jnp.float32)).astype(jnp.bfloat16)
    assert out_bf.shape == x_bf.shape and out_bf.dtype == jnp.bfloat16
    assert jnp.allclose(out_bf.astype(jnp.float32), ref_bf.astype(jnp.float32),
                        atol=2e-2, rtol=2e-2), "mismatch (bf16)"

    print("KERNEL_OK")
</pallas_src>

<mosaic_0001>
module attributes {stable_mosaic.version = 11 : i64} {
  func.func @_gelu_kernel(%arg0: i32, %arg1: memref<8x256xf32, #tpu.memory_space<vmem>>, %arg2: memref<8x256xf32, #tpu.memory_space<vmem>>) attributes {dimension_semantics = [#tpu.dimension_semantics<parallel>], iteration_bounds = array<i64: 1>, scalar_prefetch = 0 : i64, scratch_operands = 0 : i64, tpu.core_type = #tpu.core_type<tc>, window_params = [{transform_indices = @transform_0, window_bounds = array<i64: 8, 256>}, {transform_indices = @transform_1, window_bounds = array<i64: 8, 256>}]} {
    %c0 = arith.constant 0 : index
    %c0_0 = arith.constant 0 : index
    %0 = vector.load %arg1[%c0, %c0_0] : memref<8x256xf32, #tpu.memory_space<vmem>>, vector<8x256xf32>
    %1 = arith.mulf %0, %0 : vector<8x256xf32>
    %cst = arith.constant 0.0356774069 : f32
    %2 = vector.broadcast %cst : f32 to vector<8x256xf32>
    %3 = arith.mulf %2, %1 : vector<8x256xf32>
    %cst_1 = arith.constant 0.797884583 : f32
    %4 = vector.broadcast %cst_1 : f32 to vector<8x256xf32>
    %5 = arith.addf %4, %3 : vector<8x256xf32>
    %6 = arith.mulf %0, %5 : vector<8x256xf32>
    %cst_2 = arith.constant 5.000000e-01 : f32
    %7 = vector.broadcast %cst_2 : f32 to vector<8x256xf32>
    %8 = arith.mulf %7, %0 : vector<8x256xf32>
    %9 = math.tanh %6 : vector<8x256xf32>
    %10 = arith.mulf %8, %9 : vector<8x256xf32>
    %11 = arith.addf %8, %10 : vector<8x256xf32>
    %c0_3 = arith.constant 0 : index
    %c0_4 = arith.constant 0 : index
    %12 = vector.load %arg2[%c0_3, %c0_4] : memref<8x256xf32, #tpu.memory_space<vmem>>, vector<8x256xf32>
    tpu.vector_store %arg2[%c0_3, %c0_4], %11 {strides = array<i32>} : memref<8x256xf32, #tpu.memory_space<vmem>>, vector<8x256xf32>,
    return
  }
  func.func @transform_0(%arg0: i32) -> (i32, i32) {
    %c0_i32 = arith.constant 0 : i32
    %c0_i32_0 = arith.constant 0 : i32
    return %arg0, %c0_i32 : i32, i32
  }
  func.func @transform_1(%arg0: i32) -> (i32, i32) {
    %c0_i32 = arith.constant 0 : i32
    %c0_i32_0 = arith.constant 0 : i32
    return %arg0, %c0_i32 : i32, i32
  }
}

</mosaic_0001>

<bundles_post_ra>
// kernel: tpu_custom_call.1
= control target key start
LH: loop header
LB: loop body
LE: loop exit
PB: predicated region body
PF: predicated region fallthrough
CT: control target
= control target key end

     0   :  { %6 = vsyncpa [#allocation3], 0  ;;  %s146_s0 = inlined_call_operand.hbm [shape: f32[8,256], index: 0, kind: input, shape index: {}]   ;;  %s147_s1 = inlined_call_operand.hbm [shape: f32[8,256], index: 1, kind: output, shape index: {}]  }
   0x1   :  { %7 = vsyncpa [#allocation4], 0  ;;  %s110_s6 = smov [#allocation2]   ;;  %s62_s10 = scalar_lea.hbm %s146_s0, 256 }
   0x2   :  { %s14_s7 = sshll.u32 %s110_s6, 4  ;;  %p63_p0 = scmp.ne.s32.totalorder %s146_s0, %s62_s10  ;;  %s15_s7 = int_to_ptr.vmem [resolvable:$true] %s14_s7 }
   0x3   :  { %p66_p1 = scmp.lt.u32.totalorder %s62_s10, %s146_s0 }
   0x5   :  { %p68_p2 = pnand %p66_p1, %p63_p0 }
   0x7   :  { %71 = shalt.err (!%p68_p2)
}
   0x8   :  { %s72_s15 = scalar_lea.vmem %s15_s7, 256  ;;  %p77_p4 = scmp.lt.s32.totalorder %s15_s7, %s15_s7 }
   0x9   :  { %p73_p3 = scmp.ne.s32.totalorder %s15_s7, %s72_s15  ;;  %p78_p5 = scmp.lt.s32.totalorder %s72_s15, %s72_s15 }
   0xb   :  { %p79_p6 = por %p78_p5, %p77_p4 }
   0xd   :  { %p80_p7 = pnand %p79_p6, %p73_p3 }
   0xf   :  { %83 = shalt.err (!%p80_p7)
}
  0x10   :  { %17 = dma.hbm_to_vmem [thread:$0]  %s146_s0, 256, %s15_s7, [#allocation3]  }
  0x11   :  { %106 = dma.done.wait [#allocation3], 256  }
  0x12   :  { %107 = vsyncadd [#allocation3], 4294967040  ;;  %v21_v0 = vld [vmem:[#allocation2] sm:$0xff]  ;;  %v22_v1 = vld [vmem:[#allocation2 + $0x8] sm:$0xff]  ;;  %s111_s0 = smov [#allocation5]  }
  0x13   :  { %v23_v2 = vmul.f32 %v21_v0, %v21_v0  ;;  %v24_v3 = vmul.f32 %v22_v1, %v22_v1  ;;  %v31_v10 = vmul.f32 0.5, %v21_v0  ;;  %v32_v11 = vmul.f32 0.5, %v22_v1  ;;  %s47_s18 = sshll.u32 %s111_s0, 4  ;;  %s48_s18 = int_to_ptr.vmem [resolvable:$true] %s47_s18 }
  0x14   :  { %s84_s19 = scalar_lea.vmem %s48_s18, 256  ;;  %p89_p9 = scmp.lt.s32.totalorder %s48_s18, %s48_s18 }
  0x15   :  { %v25_v4 = vmul.f32 0.035677407, %v23_v2  ;;  %v26_v5 = vmul.f32 0.035677407, %v24_v3  ;;  %p85_p8 = scmp.ne.s32.totalorder %s48_s18, %s84_s19  ;;  %p90_p10 = scmp.lt.s32.totalorder %s84_s19, %s84_s19 }
  0x17   :  { %v27_v6 = vadd.f32 0.7978846, %v25_v4  ;;  %v28_v7 = vadd.f32 0.7978846, %v26_v5  ;;  %p91_p11 = por %p90_p10, %p89_p9 }
  0x19   :  { %v29_v8 = vmul.f32 %v27_v6, %v21_v0  ;;  %v30_v9 = vmul.f32 %v28_v7, %v22_v1  ;;  %p92_p12 = pnand %p91_p11, %p85_p8 }
  0x1b   :  { %58 = vtanh.f32 %v29_v8 }
  0x1c   :  { %60 = vtanh.f32 %v30_v9 }
  0x25   :  { %v59_v12 = vpop.eup %58 }
  0x26   :  { %v61_v13 = vpop.eup %60  ;;  %v35_v14 = vmul.f32 %v59_v12, %v31_v10 }
  0x27   :  { %v36_v15 = vmul.f32 %v61_v13, %v32_v11 }
  0x28   :  { %v37_v16 = vadd.f32 %v35_v14, %v31_v10 }
  0x29   :  { %v38_v17 = vadd.f32 %v36_v15, %v32_v11 }
  0x2a   :  { %39 = vst [vmem:[#allocation5] sm:$0xff] %v37_v16 }
  0x2b   :  { %40 = vst [vmem:[#allocation5 + $0x8] sm:$0xff] %v38_v17 }
  0x2c   :  { %95 = shalt.err (!%p92_p12)
}
  0x2d   :  { %s96_s22 = scalar_lea.hbm %s147_s1, 256 }
  0x2e   :  { %p97_p13 = scmp.ne.s32.totalorder %s147_s1, %s96_s22  ;;  %p100_p0 = scmp.lt.u32.totalorder %s96_s22, %s147_s1 }
  0x30   :  { %p102_p1 = pnand %p100_p0, %p97_p13 }
  0x32   :  { %105 = shalt.err (!%p102_p1)
}
  0x33   :  { %50 = dma.vmem_to_hbm [thread:$0]  %s48_s18, 256, %s147_s1, [#allocation4]  }
  0x34   :  { %108 = dma.done.wait [#allocation4], 256  }
  0x35   :  { %109 = vsyncadd [#allocation4], 4294967040 }
  0x36   :  { %54 = vsyncpa [#allocation3], 1 }
  0x37   :  { %55 = vsyncpa [#allocation4], 1 }

</bundles_post_ra>
